<compile_context>
chip_gen: v5e
topology: v5e:2x2
jax: 0.10.0
libtpu: 0.0.40
codegen_flags: <defaults>
</compile_context>

<pallas_src>
import functools

import jax
import jax.numpy as jnp
from jax.experimental import pallas as pl
from jax.experimental.pallas import tpu as pltpu


# --------------------------------------------------------------------------
# Shared color-jitter math (used by BOTH the Pallas kernel and the pure-JAX
# reference so the two are structurally identical).
# Operates on (N, HW) channel planes; each row is one image's channel plane.
# Images are assumed float in [0, 1] (torchvision convention).
# --------------------------------------------------------------------------
def _jitter_planes(r, g, b, bf, cf, sf, hf):
    one = jnp.float32(1.0)
    zero = jnp.float32(0.0)

    # ---- brightness: blend(img, 0, bf) ----
    r = jnp.clip(r * bf, 0.0, 1.0)
    g = jnp.clip(g * bf, 0.0, 1.0)
    b = jnp.clip(b * bf, 0.0, 1.0)

    # ---- contrast: blend(img, mean(gray(img)), cf) ----
    one_m_cf = one - cf                                   # hoisted scalar
    gray = 0.299 * r + 0.587 * g + 0.114 * b
    mean = jnp.mean(gray, axis=-1, keepdims=True)         # per-image mean
    cmix = one_m_cf * mean
    r = jnp.clip(cf * r + cmix, 0.0, 1.0)
    g = jnp.clip(cf * g + cmix, 0.0, 1.0)
    b = jnp.clip(cf * b + cmix, 0.0, 1.0)

    # ---- saturation: blend(img, gray(img), sf) ----
    one_m_sf = one - sf                                   # hoisted scalar
    gray = 0.299 * r + 0.587 * g + 0.114 * b
    r = jnp.clip(sf * r + one_m_sf * gray, 0.0, 1.0)
    g = jnp.clip(sf * g + one_m_sf * gray, 0.0, 1.0)
    b = jnp.clip(sf * b + one_m_sf * gray, 0.0, 1.0)

    # ---- hue: RGB -> HSV, h += hf (mod 1), HSV -> RGB ----
    maxc = jnp.maximum(jnp.maximum(r, g), b)
    minc = jnp.minimum(jnp.minimum(r, g), b)
    eqc = maxc == minc
    cr = maxc - minc
    ones = jnp.ones_like(maxc)
    # 2 divides per pixel (was 4): s = cr/maxc and a shared 1/chroma.
    # TODO(synk): pl.reciprocal(approx=True) would be cheaper in-kernel, but it
    # cannot be shared with the pure-JAX reference; kept exact division.
    s = cr / jnp.where(eqc, ones, maxc)
    inv_cr = one / jnp.where(eqc, ones, cr)
    rc = (maxc - r) * inv_cr
    gc = (maxc - g) * inv_cr
    bc = (maxc - b) * inv_cr
    max_is_r = maxc == r
    max_is_g = (maxc == g) & (~max_is_r)
    max_is_b = (~max_is_r) & (maxc != g)
    hr = jnp.where(max_is_r, bc - gc, zero)
    hg = jnp.where(max_is_g, 2.0 + rc - bc, zero)
    hb = jnp.where(max_is_b, 4.0 + gc - rc, zero)
    h = (hr + hg + hb) / 6.0 + 1.0
    h = h - jnp.floor(h)            # fmod(., 1) for non-negative values
    h = h + hf
    h = h - jnp.floor(h)            # wrap back into [0, 1)

    v = maxc
    h6 = h * 6.0
    i_f = jnp.floor(h6)
    f = h6 - i_f
    i_f = jnp.minimum(i_f, 5.0)     # guard h6 == 6.0 edge; stays float (no int %)
    p = v * (one - s)
    q = v * (one - s * f)
    t = v * (one - s * (one - f))

    # Sector masks computed once and reused across the three channels.
    eq0 = i_f == 0.0
    eq1 = i_f == 1.0
    eq2 = i_f == 2.0
    eq3 = i_f == 3.0
    eq4 = i_f == 4.0
    # Sector tables (i = 0..5): r:[v,q,p,p,t,v] g:[t,v,v,q,p,p] b:[p,p,t,v,v,q]
    r_out = jnp.where(eq0, v, jnp.where(eq1, q, jnp.where(eq2 | eq3, p,
            jnp.where(eq4, t, v))))
    g_out = jnp.where(eq0, t, jnp.where(eq1 | eq2, v, jnp.where(eq3, q, p)))
    b_out = jnp.where(eq0 | eq1, p, jnp.where(eq2, t, jnp.where(eq3 | eq4, v, q)))

    # Final range clamp (guards ulp-level excursions from the reciprocal path).
    r_out = jnp.clip(r_out, 0.0, 1.0)
    g_out = jnp.clip(g_out, 0.0, 1.0)
    b_out = jnp.clip(b_out, 0.0, 1.0)
    return r_out, g_out, b_out


# --------------------------------------------------------------------------
# Kernel
# --------------------------------------------------------------------------
def _color_jitter_kernel(f_ref, x_ref, o_ref, *, hw):
    """f_ref: SMEM (4,) f32 = [bf, cf, sf, hf]; x/o_ref: VMEM (TB, 3*HW)."""
    bf = f_ref[0]
    cf = f_ref[1]
    sf = f_ref[2]
    hf = f_ref[3]

    # Static lane slices: the three channel planes of this batch tile.
    r = x_ref[:, 0 * hw:1 * hw].astype(jnp.float32)
    g = x_ref[:, 1 * hw:2 * hw].astype(jnp.float32)
    b = x_ref[:, 2 * hw:3 * hw].astype(jnp.float32)

    r_out, g_out, b_out = _jitter_planes(r, g, b, bf, cf, sf, hf)

    o_ref[:, 0 * hw:1 * hw] = r_out.astype(o_ref.dtype)
    o_ref[:, 1 * hw:2 * hw] = g_out.astype(o_ref.dtype)
    o_ref[:, 2 * hw:3 * hw] = b_out.astype(o_ref.dtype)


# --------------------------------------------------------------------------
# Wrapper
# --------------------------------------------------------------------------
def _pick_batch_tile(B: int, HW: int, itemsize: int) -> int:
    """Batch tile bounded by a VMEM budget; keeps multiple grid steps when the
    batch is large enough (v7x megacore / DMA pipelining)."""
    # Dtype-aware sublane granularity (packed dtypes pack along sublanes).
    if itemsize >= 4:
        sub = 8
    elif itemsize == 2:
        sub = 16
    else:
        sub = 32
    # Per-row bytes: (in + out) x double-buffered blocks + ~16 live f32 temps.
    budget = 24 << 20            # leaves headroom inside v7x's 64 MiB VMEM
    bytes_per_row = 3 * HW * itemsize * 4 + 16 * HW * 4
    tb = max(1, budget // bytes_per_row)
    # Keep >=2 (ideally >=4) grid steps for big batches so both v7x TCs and
    # the DMA/compute pipeline get work.
    if B >= 4 * sub:
        steps = 4
    elif B >= 2 * sub:
        steps = 2
    else:
        steps = 1
    if steps > 1:
        tb = min(tb, max(sub, ((B // steps) // sub) * sub))
    if tb >= B:
        return B
    if tb > sub:
        tb = (tb // sub) * sub
    # TODO(synk): for extremely large images (single row exceeds the budget)
    # a second grid axis tiling HW (with a first-pass gray-mean) would be
    # needed; small tb with padded sublanes is used instead.
    return max(1, min(tb, B))


@jax.jit
def _color_jitter_nchw(x: jax.Array, factors: jax.Array) -> jax.Array:
    """Apply color jitter (factors = [bf, cf, sf, hf]) to an NCHW RGB batch."""
    B, C, H, W = x.shape
    if C != 3:
        raise ValueError("color_jitter expects 3-channel RGB images")
    HW = H * W

    # Free (row-major) reshape: per image, the three channel planes are
    # contiguous -> one lane-dense (B, 3*HW) array, no strided slices/stack.
    xf = x.reshape(B, C * HW)

    tb = _pick_batch_tile(B, HW, jnp.dtype(x.dtype).itemsize)
    grid = (pl.cdiv(B, tb),)
    spec = pl.BlockSpec((tb, C * HW), lambda i: (i, 0))

    out = pl.pallas_call(
        functools.partial(_color_jitter_kernel, hw=HW),
        out_shape=jax.ShapeDtypeStruct((B, C * HW), x.dtype),
        grid=grid,
        in_specs=[
            pl.BlockSpec(memory_space=pltpu.MemorySpace.SMEM),  # factors (4,)
            spec,
        ],
        out_specs=spec,
        compiler_params=pltpu.CompilerParams(
            dimension_semantics=("parallel",),
            vmem_limit_bytes=64 * 1024 * 1024,
        ),
    )(factors.astype(jnp.float32), xf)

    return out.reshape(B, C, H, W)


class ColorJitter:
    """JAX/Pallas port of the PyTorch `ColorJitter` nn.Module.

    In the original code each dict value is a callable data object; calling it
    with 'color_jitter' applies torchvision-style brightness/contrast/
    saturation/hue jitter.  Here each dict value is an NCHW float RGB array in
    [0, 1] and the Pallas color-jitter kernel is applied directly.
    """

    # TODO(synk): torchvision applies the 4 jitter ops in a random per-call
    # order; here the order is fixed to brightness -> contrast -> saturation
    # -> hue.

    def __init__(self, brightness=0, contrast=0, saturation=0, hue=0):
        self.brightness = float(brightness)
        self.contrast = float(contrast)
        self.saturation = float(saturation)
        self.hue = float(hue)

    def _sample_factors(self, key) -> jax.Array:
        kb, kc, ks, kh = jax.random.split(key, 4)

        def sample_mult(k, jitter):
            if jitter <= 0:
                return jnp.float32(1.0)
            lo, hi = max(0.0, 1.0 - jitter), 1.0 + jitter
            return jax.random.uniform(k, (), jnp.float32, lo, hi)

        bf = sample_mult(kb, self.brightness)
        cf = sample_mult(kc, self.contrast)
        sf = sample_mult(ks, self.saturation)
        if self.hue > 0:
            hf = jax.random.uniform(kh, (), jnp.float32, -self.hue, self.hue)
        else:
            hf = jnp.float32(0.0)
        return jnp.stack([bf, cf, sf, hf])

    def __call__(self, inputs, outputs=None, key=None):
        if key is None:
            key = jax.random.PRNGKey(0)
        factors = self._sample_factors(key)

        new_inputs = {n: _color_jitter_nchw(v, factors) for n, v in inputs.items()}
        if outputs is not None:
            new_outputs = {n: _color_jitter_nchw(v, factors)
                           for n, v in outputs.items()}
            return new_inputs, new_outputs
        return new_inputs


# --------------------------------------------------------------------------
# Pure-JAX reference (same shared math, no Pallas) for correctness checking.
# --------------------------------------------------------------------------
def _reference_color_jitter(x, factors):
    B, C, H, W = x.shape
    xr = x.astype(jnp.float32).reshape(B, C, H * W)
    r_out, g_out, b_out = _jitter_planes(
        xr[:, 0], xr[:, 1], xr[:, 2],
        factors[0], factors[1], factors[2], factors[3])
    return jnp.stack([r_out, g_out, b_out], axis=1).reshape(B, C, H, W).astype(x.dtype)


if __name__ == "__main__":
    key = jax.random.PRNGKey(0)
    k_in, k_out, k_jitter = jax.random.split(key, 3)

    B, C, H, W = 2, 3, 16, 16
    img = jax.random.uniform(k_in, (B, C, H, W), dtype=jnp.float32)
    img_goal = jax.random.uniform(k_out, (B, C, H, W), dtype=jnp.float32)

    module = ColorJitter(brightness=0.4, contrast=0.4, saturation=0.4, hue=0.1)

    inputs = {"rgb": img}
    outputs = {"rgb_goal": img_goal}

    new_inputs, new_outputs = module(inputs, outputs, key=k_jitter)
    jax.block_until_ready(new_inputs["rgb"])
    jax.block_until_ready(new_outputs["rgb_goal"])

    # Correctness check against the pure-JAX reference using identical factors.
    factors = module._sample_factors(k_jitter)
    ref_in = _reference_color_jitter(img, factors)
    ref_out = _reference_color_jitter(img_goal, factors)
    assert jnp.allclose(new_inputs["rgb"], ref_in, atol=1e-4, rtol=1e-4)
    assert jnp.allclose(new_outputs["rgb_goal"], ref_out, atol=1e-4, rtol=1e-4)

    # Sanity: outputs stay in [0, 1].
    assert float(new_inputs["rgb"].min()) >= 0.0
    assert float(new_inputs["rgb"].max()) <= 1.0

    print("KERNEL_OK")
</pallas_src>

<mosaic_0001>
module attributes {stable_mosaic.version = 11 : i64} {
  func.func @_color_jitter_kernel(%arg0: i32, %arg1: memref<4xf32, #tpu.memory_space<smem>>, %arg2: memref<2x768xf32, #tpu.memory_space<vmem>>, %arg3: memref<2x768xf32, #tpu.memory_space<vmem>>) attributes {dimension_semantics = [#tpu.dimension_semantics<parallel>], iteration_bounds = array<i64: 1>, scalar_prefetch = 0 : i64, scratch_operands = 0 : i64, tpu.core_type = #tpu.core_type<tc>, window_params = [{transform_indices = @transform_0, window_bounds = array<i64: 4>}, {transform_indices = @transform_1, window_bounds = array<i64: 2, 768>}, {transform_indices = @transform_2, window_bounds = array<i64: 2, 768>}]} {
    %c0 = arith.constant 0 : index
    %0 = memref.load %arg1[%c0] : memref<4xf32, #tpu.memory_space<smem>>
    %c1 = arith.constant 1 : index
    %1 = memref.load %arg1[%c1] : memref<4xf32, #tpu.memory_space<smem>>
    %c2 = arith.constant 2 : index
    %2 = memref.load %arg1[%c2] : memref<4xf32, #tpu.memory_space<smem>>
    %c3 = arith.constant 3 : index
    %3 = memref.load %arg1[%c3] : memref<4xf32, #tpu.memory_space<smem>>
    %c0_0 = arith.constant 0 : index
    %c0_1 = arith.constant 0 : index
    %4 = vector.load %arg2[%c0_0, %c0_1] : memref<2x768xf32, #tpu.memory_space<vmem>>, vector<2x256xf32>
    %c0_2 = arith.constant 0 : index
    %c256 = arith.constant 256 : index
    %5 = vector.load %arg2[%c0_2, %c256] : memref<2x768xf32, #tpu.memory_space<vmem>>, vector<2x256xf32>
    %c0_3 = arith.constant 0 : index
    %c512 = arith.constant 512 : index
    %6 = vector.load %arg2[%c0_3, %c512] : memref<2x768xf32, #tpu.memory_space<vmem>>, vector<2x256xf32>
    %7 = vector.broadcast %0 : f32 to vector<2x256xf32>
    %8 = arith.mulf %4, %7 : vector<2x256xf32>
    %cst = arith.constant 0.000000e+00 : f32
    %cst_4 = arith.constant 1.000000e+00 : f32
    %9 = vector.broadcast %cst : f32 to vector<2x256xf32>
    %10 = arith.maximumf %9, %8 : vector<2x256xf32>
    %11 = vector.broadcast %cst_4 : f32 to vector<2x256xf32>
    %12 = arith.minimumf %11, %10 : vector<2x256xf32>
    %13 = vector.broadcast %0 : f32 to vector<2x256xf32>
    %14 = arith.mulf %5, %13 : vector<2x256xf32>
    %cst_5 = arith.constant 0.000000e+00 : f32
    %cst_6 = arith.constant 1.000000e+00 : f32
    %15 = vector.broadcast %cst_5 : f32 to vector<2x256xf32>
    %16 = arith.maximumf %15, %14 : vector<2x256xf32>
    %17 = vector.broadcast %cst_6 : f32 to vector<2x256xf32>
    %18 = arith.minimumf %17, %16 : vector<2x256xf32>
    %19 = vector.broadcast %0 : f32 to vector<2x256xf32>
    %20 = arith.mulf %6, %19 : vector<2x256xf32>
    %cst_7 = arith.constant 0.000000e+00 : f32
    %cst_8 = arith.constant 1.000000e+00 : f32
    %21 = vector.broadcast %cst_7 : f32 to vector<2x256xf32>
    %22 = arith.maximumf %21, %20 : vector<2x256xf32>
    %23 = vector.broadcast %cst_8 : f32 to vector<2x256xf32>
    %24 = arith.minimumf %23, %22 : vector<2x256xf32>
    %cst_9 = arith.constant 1.000000e+00 : f32
    %25 = arith.subf %cst_9, %1 : f32
    %cst_10 = arith.constant 2.990000e-01 : f32
    %26 = vector.broadcast %cst_10 : f32 to vector<2x256xf32>
    %27 = arith.mulf %26, %12 : vector<2x256xf32>
    %cst_11 = arith.constant 5.870000e-01 : f32
    %28 = vector.broadcast %cst_11 : f32 to vector<2x256xf32>
    %29 = arith.mulf %28, %18 : vector<2x256xf32>
    %30 = arith.addf %27, %29 : vector<2x256xf32>
    %cst_12 = arith.constant 1.140000e-01 : f32
    %31 = vector.broadcast %cst_12 : f32 to vector<2x256xf32>
    %32 = arith.mulf %31, %24 : vector<2x256xf32>
    %33 = arith.addf %30, %32 : vector<2x256xf32>
    %cst_13 = arith.constant dense<0.000000e+00> : vector<2xf32>
    %34 = vector.multi_reduction <add>, %33, %cst_13 [1] : vector<2x256xf32> to vector<2xf32>
    %35 = vector.shape_cast %34 : vector<2xf32> to vector<2x1xf32>
    %cst_14 = arith.constant 2.560000e+02 : f32
    %36 = vector.broadcast %cst_14 : f32 to vector<2x1xf32>
    %37 = arith.divf %35, %36 : vector<2x1xf32>
    %38 = vector.broadcast %25 : f32 to vector<2x1xf32>
    %39 = arith.mulf %38, %37 : vector<2x1xf32>
    %40 = vector.broadcast %1 : f32 to vector<2x256xf32>
    %41 = arith.mulf %40, %12 : vector<2x256xf32>
    %42 = vector.broadcast %39 : vector<2x1xf32> to vector<2x256xf32>
    %43 = arith.addf %41, %42 : vector<2x256xf32>
    %cst_15 = arith.constant 0.000000e+00 : f32
    %cst_16 = arith.constant 1.000000e+00 : f32
    %44 = vector.broadcast %cst_15 : f32 to vector<2x256xf32>
    %45 = arith.maximumf %44, %43 : vector<2x256xf32>
    %46 = vector.broadcast %cst_16 : f32 to vector<2x256xf32>
    %47 = arith.minimumf %46, %45 : vector<2x256xf32>
    %48 = vector.broadcast %1 : f32 to vector<2x256xf32>
    %49 = arith.mulf %48, %18 : vector<2x256xf32>
    %50 = vector.broadcast %39 : vector<2x1xf32> to vector<2x256xf32>
    %51 = arith.addf %49, %50 : vector<2x256xf32>
    %cst_17 = arith.constant 0.000000e+00 : f32
    %cst_18 = arith.constant 1.000000e+00 : f32
    %52 = vector.broadcast %cst_17 : f32 to vector<2x256xf32>
    %53 = arith.maximumf %52, %51 : vector<2x256xf32>
    %54 = vector.broadcast %cst_18 : f32 to vector<2x256xf32>
    %55 = arith.minimumf %54, %53 : vector<2x256xf32>
    %56 = vector.broadcast %1 : f32 to vector<2x256xf32>
    %57 = arith.mulf %56, %24 : vector<2x256xf32>
    %58 = vector.broadcast %39 : vector<2x1xf32> to vector<2x256xf32>
    %59 = arith.addf %57, %58 : vector<2x256xf32>
    %cst_19 = arith.constant 0.000000e+00 : f32
    %cst_20 = arith.constant 1.000000e+00 : f32
    %60 = vector.broadcast %cst_19 : f32 to vector<2x256xf32>
    %61 = arith.maximumf %60, %59 : vector<2x256xf32>
    %62 = vector.broadcast %cst_20 : f32 to vector<2x256xf32>
    %63 = arith.minimumf %62, %61 : vector<2x256xf32>
    %cst_21 = arith.constant 1.000000e+00 : f32
    %64 = arith.subf %cst_21, %2 : f32
    %cst_22 = arith.constant 2.990000e-01 : f32
    %65 = vector.broadcast %cst_22 : f32 to vector<2x256xf32>
    %66 = arith.mulf %65, %47 : vector<2x256xf32>
    %cst_23 = arith.constant 5.870000e-01 : f32
    %67 = vector.broadcast %cst_23 : f32 to vector<2x256xf32>
    %68 = arith.mulf %67, %55 : vector<2x256xf32>
    %69 = arith.addf %66, %68 : vector<2x256xf32>
    %cst_24 = arith.constant 1.140000e-01 : f32
    %70 = vector.broadcast %cst_24 : f32 to vector<2x256xf32>
    %71 = arith.mulf %70, %63 : vector<2x256xf32>
    %72 = arith.addf %69, %71 : vector<2x256xf32>
    %73 = vector.broadcast %2 : f32 to vector<2x256xf32>
    %74 = arith.mulf %73, %47 : vector<2x256xf32>
    %75 = vector.broadcast %64 : f32 to vector<2x256xf32>
    %76 = arith.mulf %75, %72 : vector<2x256xf32>
    %77 = arith.addf %74, %76 : vector<2x256xf32>
    %cst_25 = arith.constant 0.000000e+00 : f32
    %cst_26 = arith.constant 1.000000e+00 : f32
    %78 = vector.broadcast %cst_25 : f32 to vector<2x256xf32>
    %79 = arith.maximumf %78, %77 : vector<2x256xf32>
    %80 = vector.broadcast %cst_26 : f32 to vector<2x256xf32>
    %81 = arith.minimumf %80, %79 : vector<2x256xf32>
    %82 = vector.broadcast %2 : f32 to vector<2x256xf32>
    %83 = arith.mulf %82, %55 : vector<2x256xf32>
    %84 = vector.broadcast %64 : f32 to vector<2x256xf32>
    %85 = arith.mulf %84, %72 : vector<2x256xf32>
    %86 = arith.addf %83, %85 : vector<2x256xf32>
    %cst_27 = arith.constant 0.000000e+00 : f32
    %cst_28 = arith.constant 1.000000e+00 : f32
    %87 = vector.broadcast %cst_27 : f32 to vector<2x256xf32>
    %88 = arith.maximumf %87, %86 : vector<2x256xf32>
    %89 = vector.broadcast %cst_28 : f32 to vector<2x256xf32>
    %90 = arith.minimumf %89, %88 : vector<2x256xf32>
    %91 = vector.broadcast %2 : f32 to vector<2x256xf32>
    %92 = arith.mulf %91, %63 : vector<2x256xf32>
    %93 = vector.broadcast %64 : f32 to vector<2x256xf32>
    %94 = arith.mulf %93, %72 : vector<2x256xf32>
    %95 = arith.addf %92, %94 : vector<2x256xf32>
    %cst_29 = arith.constant 0.000000e+00 : f32
    %cst_30 = arith.constant 1.000000e+00 : f32
    %96 = vector.broadcast %cst_29 : f32 to vector<2x256xf32>
    %97 = arith.maximumf %96, %95 : vector<2x256xf32>
    %98 = vector.broadcast %cst_30 : f32 to vector<2x256xf32>
    %99 = arith.minimumf %98, %97 : vector<2x256xf32>
    %100 = arith.maximumf %81, %90 : vector<2x256xf32>
    %101 = arith.maximumf %100, %99 : vector<2x256xf32>
    %102 = arith.minimumf %81, %90 : vector<2x256xf32>
    %103 = arith.minimumf %102, %99 : vector<2x256xf32>
    %104 = arith.cmpf oeq, %101, %103 : vector<2x256xf32>
    %105 = arith.subf %101, %103 : vector<2x256xf32>
    %cst_31 = arith.constant 1.000000e+00 : f32
    %106 = vector.broadcast %cst_31 : f32 to vector<2x256xf32>
    %107 = arith.select %104, %106, %101 : vector<2x256xi1>, vector<2x256xf32>
    %108 = arith.divf %105, %107 : vector<2x256xf32>
    %109 = arith.select %104, %106, %105 : vector<2x256xi1>, vector<2x256xf32>
    %cst_32 = arith.constant 1.000000e+00 : f32
    %110 = vector.broadcast %cst_32 : f32 to vector<2x256xf32>
    %111 = arith.divf %110, %109 : vector<2x256xf32>
    %112 = arith.subf %101, %81 : vector<2x256xf32>
    %113 = arith.mulf %112, %111 : vector<2x256xf32>
    %114 = arith.subf %101, %90 : vector<2x256xf32>
    %115 = arith.mulf %114, %111 : vector<2x256xf32>
    %116 = arith.subf %101, %99 : vector<2x256xf32>
    %117 = arith.mulf %116, %111 : vector<2x256xf32>
    %118 = arith.cmpf oeq, %101, %81 : vector<2x256xf32>
    %119 = arith.cmpf oeq, %101, %90 : vector<2x256xf32>
    %cst_33 = arith.constant dense<true> : vector<2x256xi1>
    %120 = arith.xori %118, %cst_33 : vector<2x256xi1>
    %121 = arith.andi %119, %120 : vector<2x256xi1>
    %cst_34 = arith.constant dense<true> : vector<2x256xi1>
    %122 = arith.xori %118, %cst_34 : vector<2x256xi1>
    %123 = arith.cmpf one, %101, %90 : vector<2x256xf32>
    %124 = arith.andi %122, %123 : vector<2x256xi1>
    %125 = arith.subf %117, %115 : vector<2x256xf32>
    %cst_35 = arith.constant 0.000000e+00 : f32
    %126 = vector.broadcast %cst_35 : f32 to vector<2x256xf32>
    %127 = arith.select %118, %125, %126 : vector<2x256xi1>, vector<2x256xf32>
    %cst_36 = arith.constant 2.000000e+00 : f32
    %128 = vector.broadcast %cst_36 : f32 to vector<2x256xf32>
    %129 = arith.addf %128, %113 : vector<2x256xf32>
    %130 = arith.subf %129, %117 : vector<2x256xf32>
    %cst_37 = arith.constant 0.000000e+00 : f32
    %131 = vector.broadcast %cst_37 : f32 to vector<2x256xf32>
    %132 = arith.select %121, %130, %131 : vector<2x256xi1>, vector<2x256xf32>
    %cst_38 = arith.constant 4.000000e+00 : f32
    %133 = vector.broadcast %cst_38 : f32 to vector<2x256xf32>
    %134 = arith.addf %133, %115 : vector<2x256xf32>
    %135 = arith.subf %134, %113 : vector<2x256xf32>
    %cst_39 = arith.constant 0.000000e+00 : f32
    %136 = vector.broadcast %cst_39 : f32 to vector<2x256xf32>
    %137 = arith.select %124, %135, %136 : vector<2x256xi1>, vector<2x256xf32>
    %138 = arith.addf %127, %132 : vector<2x256xf32>
    %139 = arith.addf %138, %137 : vector<2x256xf32>
    %cst_40 = arith.constant 6.000000e+00 : f32
    %140 = vector.broadcast %cst_40 : f32 to vector<2x256xf32>
    %141 = arith.divf %139, %140 : vector<2x256xf32>
    %cst_41 = arith.constant 1.000000e+00 : f32
    %142 = vector.broadcast %cst_41 : f32 to vector<2x256xf32>
    %143 = arith.addf %141, %142 : vector<2x256xf32>
    %144 = math.floor %143 : vector<2x256xf32>
    %145 = arith.subf %143, %144 : vector<2x256xf32>
    %146 = vector.broadcast %3 : f32 to vector<2x256xf32>
    %147 = arith.addf %145, %146 : vector<2x256xf32>
    %148 = math.floor %147 : vector<2x256xf32>
    %149 = arith.subf %147, %148 : vector<2x256xf32>
    %cst_42 = arith.constant 6.000000e+00 : f32
    %150 = vector.broadcast %cst_42 : f32 to vector<2x256xf32>
    %151 = arith.mulf %149, %150 : vector<2x256xf32>
    %152 = math.floor %151 : vector<2x256xf32>
    %153 = arith.subf %151, %152 : vector<2x256xf32>
    %cst_43 = arith.constant 5.000000e+00 : f32
    %154 = vector.broadcast %cst_43 : f32 to vector<2x256xf32>
    %155 = arith.minimumf %152, %154 : vector<2x256xf32>
    %cst_44 = arith.constant 1.000000e+00 : f32
    %156 = vector.broadcast %cst_44 : f32 to vector<2x256xf32>
    %157 = arith.subf %156, %108 : vector<2x256xf32>
    %158 = arith.mulf %101, %157 : vector<2x256xf32>
    %159 = arith.mulf %108, %153 : vector<2x256xf32>
    %cst_45 = arith.constant 1.000000e+00 : f32
    %160 = vector.broadcast %cst_45 : f32 to vector<2x256xf32>
    %161 = arith.subf %160, %159 : vector<2x256xf32>
    %162 = arith.mulf %101, %161 : vector<2x256xf32>
    %cst_46 = arith.constant 1.000000e+00 : f32
    %163 = vector.broadcast %cst_46 : f32 to vector<2x256xf32>
    %164 = arith.subf %163, %153 : vector<2x256xf32>
    %165 = arith.mulf %108, %164 : vector<2x256xf32>
    %cst_47 = arith.constant 1.000000e+00 : f32
    %166 = vector.broadcast %cst_47 : f32 to vector<2x256xf32>
    %167 = arith.subf %166, %165 : vector<2x256xf32>
    %168 = arith.mulf %101, %167 : vector<2x256xf32>
    %cst_48 = arith.constant 0.000000e+00 : f32
    %169 = vector.broadcast %cst_48 : f32 to vector<2x256xf32>
    %170 = arith.cmpf oeq, %155, %169 : vector<2x256xf32>
    %cst_49 = arith.constant 1.000000e+00 : f32
    %171 = vector.broadcast %cst_49 : f32 to vector<2x256xf32>
    %172 = arith.cmpf oeq, %155, %171 : vector<2x256xf32>
    %cst_50 = arith.constant 2.000000e+00 : f32
    %173 = vector.broadcast %cst_50 : f32 to vector<2x256xf32>
    %174 = arith.cmpf oeq, %155, %173 : vector<2x256xf32>
    %cst_51 = arith.constant 3.000000e+00 : f32
    %175 = vector.broadcast %cst_51 : f32 to vector<2x256xf32>
    %176 = arith.cmpf oeq, %155, %175 : vector<2x256xf32>
    %cst_52 = arith.constant 4.000000e+00 : f32
    %177 = vector.broadcast %cst_52 : f32 to vector<2x256xf32>
    %178 = arith.cmpf oeq, %155, %177 : vector<2x256xf32>
    %179 = arith.ori %174, %176 : vector<2x256xi1>
    %180 = arith.select %178, %168, %101 : vector<2x256xi1>, vector<2x256xf32>
    %181 = arith.select %179, %158, %180 : vector<2x256xi1>, vector<2x256xf32>
    %182 = arith.select %172, %162, %181 : vector<2x256xi1>, vector<2x256xf32>
    %183 = arith.select %170, %101, %182 : vector<2x256xi1>, vector<2x256xf32>
    %184 = arith.ori %172, %174 : vector<2x256xi1>
    %185 = arith.select %176, %162, %158 : vector<2x256xi1>, vector<2x256xf32>
    %186 = arith.select %184, %101, %185 : vector<2x256xi1>, vector<2x256xf32>
    %187 = arith.select %170, %168, %186 : vector<2x256xi1>, vector<2x256xf32>
    %188 = arith.ori %170, %172 : vector<2x256xi1>
    %189 = arith.ori %176, %178 : vector<2x256xi1>
    %190 = arith.select %189, %101, %162 : vector<2x256xi1>, vector<2x256xf32>
    %191 = arith.select %174, %168, %190 : vector<2x256xi1>, vector<2x256xf32>
    %192 = arith.select %188, %158, %191 : vector<2x256xi1>, vector<2x256xf32>
    %cst_53 = arith.constant 0.000000e+00 : f32
    %cst_54 = arith.constant 1.000000e+00 : f32
    %193 = vector.broadcast %cst_53 : f32 to vector<2x256xf32>
    %194 = arith.maximumf %193, %183 : vector<2x256xf32>
    %195 = vector.broadcast %cst_54 : f32 to vector<2x256xf32>
    %196 = arith.minimumf %195, %194 : vector<2x256xf32>
    %cst_55 = arith.constant 0.000000e+00 : f32
    %cst_56 = arith.constant 1.000000e+00 : f32
    %197 = vector.broadcast %cst_55 : f32 to vector<2x256xf32>
    %198 = arith.maximumf %197, %187 : vector<2x256xf32>
    %199 = vector.broadcast %cst_56 : f32 to vector<2x256xf32>
    %200 = arith.minimumf %199, %198 : vector<2x256xf32>
    %cst_57 = arith.constant 0.000000e+00 : f32
    %cst_58 = arith.constant 1.000000e+00 : f32
    %201 = vector.broadcast %cst_57 : f32 to vector<2x256xf32>
    %202 = arith.maximumf %201, %192 : vector<2x256xf32>
    %203 = vector.broadcast %cst_58 : f32 to vector<2x256xf32>
    %204 = arith.minimumf %203, %202 : vector<2x256xf32>
    %c0_59 = arith.constant 0 : index
    %c0_60 = arith.constant 0 : index
    %205 = vector.load %arg3[%c0_59, %c0_60] : memref<2x768xf32, #tpu.memory_space<vmem>>, vector<2x256xf32>
    tpu.vector_store %arg3[%c0_59, %c0_60], %196 {strides = array<i32>} : memref<2x768xf32, #tpu.memory_space<vmem>>, vector<2x256xf32>,
    %c0_61 = arith.constant 0 : index
    %c256_62 = arith.constant 256 : index
    %206 = vector.load %arg3[%c0_61, %c256_62] : memref<2x768xf32, #tpu.memory_space<vmem>>, vector<2x256xf32>
    tpu.vector_store %arg3[%c0_61, %c256_62], %200 {strides = array<i32>} : memref<2x768xf32, #tpu.memory_space<vmem>>, vector<2x256xf32>,
    %c0_63 = arith.constant 0 : index
    %c512_64 = arith.constant 512 : index
    %207 = vector.load %arg3[%c0_63, %c512_64] : memref<2x768xf32, #tpu.memory_space<vmem>>, vector<2x256xf32>
    tpu.vector_store %arg3[%c0_63, %c512_64], %204 {strides = array<i32>} : memref<2x768xf32, #tpu.memory_space<vmem>>, vector<2x256xf32>,
    return
  }
  func.func @transform_0(%arg0: i32) -> i32 {
    %c0_i32 = arith.constant 0 : i32
    %c0_i32_0 = arith.constant 0 : i32
    return %c0_i32 : i32
  }
  func.func @transform_1(%arg0: i32) -> (i32, i32) {
    %c0_i32 = arith.constant 0 : i32
    %c0_i32_0 = arith.constant 0 : i32
    return %arg0, %c0_i32 : i32, i32
  }
  func.func @transform_2(%arg0: i32) -> (i32, i32) {
    %c0_i32 = arith.constant 0 : i32
    %c0_i32_0 = arith.constant 0 : i32
    return %arg0, %c0_i32 : i32, i32
  }
}

</mosaic_0001>

<bundles_post_ra>
// kernel: _color_jitter_nchw.1
= control target key start
LH: loop header
LB: loop body
LE: loop exit
PB: predicated region body
PF: predicated region fallthrough
CT: control target
= control target key end

     0   :  { %7 = vsyncpa [#allocation3], 0  ;;  %s260_s12 = smov [#allocation2]   ;;  %s338_s0 = inlined_call_operand.vmem [shape: f32[4], index: 0, kind: input, shape index: {}]   ;;  %s339_s1 = inlined_call_operand.vmem [shape: f32[2,768], index: 1, kind: input, shape index: {}]   ;;  %s340_s2 = inlined_call_operand.vmem [shape: f32[2,768], index: 2, kind: output, shape index: {}]  }
   0x1   :  { %s13_s11 = sshll.u32 %s338_s0, 4  ;;  %s14_s11 = int_to_ptr.vmem [resolvable:$true] %s13_s11 }
   0x2   :  { %16 = dma.vmem_to_smem %s14_s11, 16, %s260_s12, [#allocation3]  }
   0x3   :  { %258 = dma.done.wait [#allocation3], 16  }
   0x4   :  { %259 = vsyncadd [#allocation3], 4294967280 }
   0x5   :  { %23 = sfence }
   0x6   :  { %s24_s13 = sld [smem:[#allocation2]]  ;;  %v28_v0 = vld [vmem:[%s339_s1] sm:$0xf]  ;;  %v29_v1 = vld [vmem:[%s339_s1 + $0x4] sm:$0xf]  ;;  %vm53_vm0 = vcmask 1041408  }
   0x7   :  { %v30_v2 = vld [vmem:[%s339_s1 + $0x8] sm:$0xf]  ;;  %v261_v23 = vmov 256.0   ;;  %s230_s0 = sld [smem:[#allocation2 + $0x1]]  ;;  %v262_v29 = vmov 269488144  }
   0x8   :  { %238 = vrcp.f32 %v261_v23  ;;  %v73_v30 = vunpack.c.l.s4 %v262_v29  ;;  %s231_s20 = sld [smem:[#allocation2 + $0x2]]  ;;  %vm264_vm9 = vmmov 1  }
   0x9   :  { %s232_s22 = sld [smem:[#allocation2 + $0x3]] }
   0xa   :  { %v74_v36 = vunpack.c.0.s8 %v73_v30 }
   0xc   :  { %v31_v3 = vstv %s24_s13 }
   0xd   :  { %v32_v4 = vmul.f32 %v31_v3, %v28_v0  ;;  %v35_v5 = vmul.f32 %v31_v3, %v29_v1  ;;  %v38_v6 = vmul.f32 %v31_v3, %v30_v2  ;;  %s41_s1 = ssub.f32 1.0, %s230_s0  ;;  %v69_v34 = vstv %s230_s0 }
   0xe   :  { %v239_v24 = vpop.eup %238  ;;  %s88_s21 = ssub.f32 1.0, %s231_s20  ;;  %v94_v55 = vstv %s231_s20 }
   0xf   :  { %v33_v7 = vmax.f32 %v32_v4, 0.0  ;;  %v36_v8 = vmax.f32 %v35_v5, 0.0  ;;  %v39_v9 = vmax.f32 %v38_v6, 0.0  ;;  %v60_v25 = vmul.f32 256.0, %v239_v24 }
  0x10   :  { %vm64_vm1 = vweird.f32 %v239_v24  ;;  %v67_v33 = vstv %s41_s1  ;;  %v96_v56 = vstv %s88_s21 }
  0x11   :  { %v34_v10 = vmin.f32 %v33_v7, 1.0  ;;  %v37_v11 = vmin.f32 %v36_v8, 1.0  ;;  %v40_v12 = vmin.f32 %v39_v9, 1.0  ;;  %v61_v26 = vsub.f32 1.0, %v60_v25 }
  0x13   :  { %v42_v13 = vmul.f32 0.299, %v34_v10  ;;  %v43_v14 = vmul.f32 0.587, %v37_v11  ;;  %v45_v15 = vmul.f32 0.114, %v40_v12  ;;  %v62_v27 = vmul.f32 %v239_v24, %v61_v26 }
  0x14   :  { %v70_v38 = vmul.f32 %v69_v34, %v34_v10  ;;  %v80_v39 = vmul.f32 %v69_v34, %v37_v11  ;;  %v84_v40 = vmul.f32 %v69_v34, %v40_v12 }
  0x15   :  { %v44_v16 = vadd.f32 %v43_v14, %v42_v13  ;;  %v63_v28 = vadd.f32 %v239_v24, %v62_v27  ;;  %v263_v13 = vmov 6.0  }
  0x16   :  { %240 = vrcp.f32 %v263_v13 }
  0x17   :  { %v46_v17 = vadd.f32 %v45_v15, %v44_v16  ;;  %v65_v31 = vsel %vm64_vm1, %v239_v24, %v63_v28 }
  0x19   :  { %48 = vst [vmem:[#allocation1] ss:$4 sm:$0xff] %v46_v17 }
  0x1c   :  { %v241_v14 = vpop.eup %240 }
  0x1d   :  { %vm174_vm13 = vweird.f32 %v241_v14 }
  0x20   :  { %v49_v18 = vld.sshfl [vmem:[#allocation1] sm:$0xff pattern:$0x73625140]  ;;  %v50_v19 = vld.sshfl [vmem:[#allocation1 + $0x8] sm:$0xff pattern:$0x73625140] }
  0x21   :  { %v54_v20 = vsel %vm53_vm0, %v49_v18, 0.0  ;;  %v55_v21 = vsel %vm53_vm0, %v50_v19, 0.0  ;;  %v170_v18 = vmul.f32 6.0, %v241_v14 }
  0x22   :  { %v56_v22 = vadd.f32 %v55_v21, %v54_v20 }
  0x23   :  { %v171_v24 = vsub.f32 1.0, %v170_v18 }
  0x24   :  { %57 = vadd.xlane.f32.xlu0 %v56_v22 }
  0x25   :  { %v172_v34 = vmul.f32 %v241_v14, %v171_v24 }
  0x97   :  { %v58_v32 = vpop.xlane.xlu0 %57 }
  0x98   :  { %v66_v35 = vmul.f32 %v65_v31, %v58_v32 }
  0x9a   :  { %v68_v37 = vmul.f32 %v67_v33, %v66_v35 }
  0x9c   :  { %v75_v41 = vperm.slane %v68_v37, %v74_v36 }
  0x9e   :  { %v77_v42 = vadd.f32 %v75_v41, %v70_v38  ;;  %v81_v43 = vadd.f32 %v80_v39, %v75_v41  ;;  %v85_v44 = vadd.f32 %v84_v40, %v75_v41  ;;  %v173_v41 = vadd.f32 %v241_v14, %v172_v34 }
  0xa0   :  { %v78_v45 = vmax.f32 %v77_v42, 0.0  ;;  %v82_v46 = vmax.f32 %v81_v43, 0.0  ;;  %v86_v47 = vmax.f32 %v85_v44, 0.0 }
  0xa2   :  { %v79_v48 = vmin.f32 %v78_v45, 1.0  ;;  %v83_v49 = vmin.f32 %v82_v46, 1.0  ;;  %v87_v50 = vmin.f32 %v86_v47, 1.0  ;;  %v175_v47 = vsel %vm174_vm13, %v241_v14, %v173_v41 }
  0xa4   :  { %v89_v51 = vmul.f32 0.299, %v79_v48  ;;  %v90_v52 = vmul.f32 0.587, %v83_v49  ;;  %v92_v54 = vmul.f32 0.114, %v87_v50  ;;  %v95_v58 = vmul.f32 %v94_v55, %v79_v48 }
  0xa5   :  { %v101_v60 = vmul.f32 %v94_v55, %v83_v49  ;;  %v105_v61 = vmul.f32 %v94_v55, %v87_v50 }
  0xa6   :  { %v91_v53 = vadd.f32 %v90_v52, %v89_v51 }
  0xa8   :  { %v93_v57 = vadd.f32 %v92_v54, %v91_v53  ;;  %v180_v54 = vstv %s232_s22 }
  0xaa   :  { %v97_v59 = vmul.f32 %v96_v56, %v93_v57 }
  0xac   :  { %v98_v62 = vadd.f32 %v97_v59, %v95_v58  ;;  %v102_v63 = vadd.f32 %v101_v60, %v97_v59  ;;  %v106_v0 = vadd.f32 %v105_v61, %v97_v59 }
  0xae   :  { %v99_v1 = vmax.f32 %v98_v62, 0.0  ;;  %v103_v2 = vmax.f32 %v102_v63, 0.0  ;;  %v107_v3 = vmax.f32 %v106_v0, 0.0 }
  0xb0   :  { %v100_v4 = vmin.f32 %v99_v1, 1.0  ;;  %v104_v5 = vmin.f32 %v103_v2, 1.0  ;;  %v108_v6 = vmin.f32 %v107_v3, 1.0 }
  0xb2   :  { %v109_v7 = vmax.f32 %v100_v4, %v104_v5  ;;  %v111_v8 = vmin.f32 %v100_v4, %v104_v5 }
  0xb4   :  { %v292_v9 = vmax.f32 %v109_v7, %v108_v6  ;;  %v112_v10 = vmin.f32 %v111_v8, %v108_v6 }
  0xb6   :  { %vm113_vm2 = vcmp.eq.f32.partialorder %v292_v9, %v112_v10  ;;  %v296_v11 = vsub.f32 %v292_v9, %v112_v10  ;;  %v147_v26 = vsub.f32 %v292_v9, %v100_v4  ;;  %v149_v28 = vsub.f32 %v292_v9, %v104_v5 }
  0xb7   :  { %v115_v19 = vsel %vm113_vm2, 1.0, %v292_v9  ;;  %v151_v29 = vsub.f32 %v292_v9, %v108_v6  ;;  %vm153_vm7 = vcmp.eq.f32.partialorder %v292_v9, %v100_v4  ;;  %vm154_vm8 = vcmp.eq.f32.partialorder %v292_v9, %v104_v5 }
  0xb8   :  { %v131_v12 = vsel %vm113_vm2, 1.0, %v296_v11  ;;  %vm155_vm10 = vmxor %vm153_vm7, %vm264_vm9  ;;  %vm157_vm11 = vcmp.ne.f32.partialorder %v292_v9, %v104_v5  ;;  %v127_v57 = vand.u32 2147483648, %v115_v19  ;;  %vm121_vm0 = vweird.f32 %v115_v19 }
  0xb9   :  { %242 = vrcp.f32 %v131_v12  ;;  %v143_v20 = vand.u32 2147483648, %v131_v12  ;;  %v141_v22 = vand.u32 2147483647, %v131_v12  ;;  %vm137_vm4 = vweird.f32 %v131_v12  ;;  %vm156_vm12 = vmand %vm154_vm8, %vm155_vm10 }
  0xba   :  { %244 = vrcp.f32 %v115_v19  ;;  %vm158_vm14 = vmand %vm155_vm10, %vm157_vm11  ;;  %v125_v58 = vand.u32 2147483647, %v115_v19  ;;  %v128_v62 = vor.u32 1.1754944e-38, %v127_v57 }
  0xbb   :  { %v144_v25 = vor.u32 1.1754944e-38, %v143_v20  ;;  %vm142_vm6 = vcmp.eq.f32.partialorder %v141_v22, 8.507059e+37 }
  0xbc   :  { %vm126_vm2 = vcmp.eq.f32.partialorder %v125_v58, 8.507059e+37 }
  0xbf   :  { %v243_v15 = vpop.eup %242 }
  0xc0   :  { %v133_v16 = vmul.f32 %v243_v15, %v131_v12  ;;  %vm138_vm3 = vweird.f32 %v243_v15  ;;  %v245_v35 = vpop.eup %244 }
  0xc1   :  { %vm139_vm5 = vmor %vm137_vm4, %vm138_vm3  ;;  %v117_v42 = vmul.f32 %v245_v35, %v115_v19  ;;  %vm122_vm15 = vweird.f32 %v245_v35 }
  0xc2   :  { %v134_v17 = vsub.f32 1.0, %v133_v16  ;;  %vm123_vm1 = vmor %vm121_vm0, %vm122_vm15 }
  0xc3   :  { %v118_v48 = vsub.f32 1.0, %v117_v42 }
  0xc4   :  { %v135_v21 = vmul.f32 %v243_v15, %v134_v17 }
  0xc5   :  { %v119_v51 = vmul.f32 %v245_v35, %v118_v48 }
  0xc6   :  { %v136_v23 = vadd.f32 %v243_v15, %v135_v21 }
  0xc7   :  { %v120_v55 = vadd.f32 %v245_v35, %v119_v51 }
  0xc8   :  { %v140_v27 = vsel %vm139_vm5, %v243_v15, %v136_v23 }
  0xc9   :  { %v145_v30 = vsel %vm142_vm6, %v144_v25, %v140_v27  ;;  %v124_v60 = vsel %vm123_vm1, %v245_v35, %v120_v55 }
  0xca   :  { %v148_v31 = vmul.f32 %v147_v26, %v145_v30  ;;  %v150_v32 = vmul.f32 %v149_v28, %v145_v30  ;;  %v152_v33 = vmul.f32 %v151_v29, %v145_v30  ;;  %v129_v0 = vsel %vm126_vm2, %v128_v62, %v124_v60 }
  0xcb   :  { %v130_v2 = vmul.f32 %v129_v0, %v296_v11 }
  0xcc   :  { %v159_v36 = vsub.f32 %v152_v33, %v150_v32  ;;  %v161_v37 = vadd.f32 2.0, %v148_v31  ;;  %v164_v38 = vadd.f32 4.0, %v150_v32 }
  0xcd   :  { %v188_v6 = vsub.f32 1.0, %v130_v2 }
  0xce   :  { %v162_v39 = vsub.f32 %v161_v37, %v152_v33  ;;  %v165_v40 = vsub.f32 %v164_v38, %v148_v31  ;;  %v160_v43 = vsel %vm153_vm7, %v159_v36, 0.0 }
  0xcf   :  { %v189_v13 = vmul.f32 %v188_v6, %v292_v9 }
  0xd0   :  { %v163_v44 = vsel %vm156_vm12, %v162_v39, 0.0  ;;  %v166_v46 = vsel %vm158_vm14, %v165_v40, 0.0 }
  0xd1   :  { %v167_v45 = vadd.f32 %v163_v44, %v160_v43 }
  0xd3   :  { %v168_v49 = vadd.f32 %v167_v45, %v166_v46 }
  0xd5   :  { %v176_v50 = vmul.f32 %v175_v47, %v168_v49 }
  0xd7   :  { %v177_v52 = vadd.f32 1.0, %v176_v50 }
  0xd9   :  { %v178_v53 = vfloor.f32 %v177_v52 }
  0xdb   :  { %v179_v56 = vsub.f32 %v177_v52, %v178_v53 }
  0xdd   :  { %v181_v59 = vadd.f32 %v180_v54, %v179_v56 }
  0xdf   :  { %v182_v61 = vfloor.f32 %v181_v59 }
  0xe1   :  { %v183_v63 = vsub.f32 %v181_v59, %v182_v61 }
  0xe3   :  { %v184_v1 = vmul.f32 6.0, %v183_v63 }
  0xe5   :  { %v185_v3 = vfloor.f32 %v184_v1 }
  0xe7   :  { %v186_v4 = vsub.f32 %v184_v1, %v185_v3  ;;  %v187_v5 = vmin.f32 %v185_v3, 5.0 }
  0xe9   :  { %v190_v7 = vmul.f32 %v186_v4, %v130_v2  ;;  %v193_v8 = vsub.f32 1.0, %v186_v4  ;;  %vm200_vm3 = vcmp.eq.f32.partialorder %v187_v5, 3.0  ;;  %vm201_vm4 = vcmp.eq.f32.partialorder %v187_v5, 4.0 }
  0xea   :  { %vm198_vm5 = vcmp.eq.f32.partialorder %v187_v5, 1.0  ;;  %vm199_vm6 = vcmp.eq.f32.partialorder %v187_v5, 2.0  ;;  %vm197_vm7 = vcmp.eq.f32.partialorder %v187_v5, 0.0  ;;  %vm212_vm8 = vmor %vm200_vm3, %vm201_vm4 }
  0xeb   :  { %v191_v10 = vsub.f32 1.0, %v190_v7  ;;  %v194_v12 = vmul.f32 %v193_v8, %v130_v2  ;;  %vm207_vm9 = vmor %vm198_vm5, %vm199_vm6 }
  0xec   :  { %vm211_vm10 = vmor %vm197_vm7, %vm198_vm5 }
  0xed   :  { %v192_v14 = vmul.f32 %v191_v10, %v292_v9  ;;  %v195_v15 = vsub.f32 1.0, %v194_v12  ;;  %vm202_vm11 = vmor %vm199_vm6, %vm200_vm3 }
  0xef   :  { %v196_v11 = vmul.f32 %v195_v15, %v292_v9  ;;  %v208_v16 = vsel %vm200_vm3, %v192_v14, %v189_v13  ;;  %v213_v17 = vsel %vm212_vm8, %v292_v9, %v192_v14 }
  0xf0   :  { %v209_v18 = vsel %vm207_vm9, %v292_v9, %v208_v16 }
  0xf1   :  { %v203_v19 = vsel %vm201_vm4, %v196_v11, %v292_v9  ;;  %v210_v20 = vsel %vm197_vm7, %v196_v11, %v209_v18  ;;  %v214_v21 = vsel %vm199_vm6, %v196_v11, %v213_v17 }
  0xf2   :  { %v204_v22 = vsel %vm202_vm11, %v189_v13, %v203_v19  ;;  %v215_v23 = vsel %vm211_vm10, %v189_v13, %v214_v21  ;;  %v218_v24 = vmax.f32 %v210_v20, 0.0 }
  0xf3   :  { %v205_v25 = vsel %vm198_vm5, %v192_v14, %v204_v22  ;;  %v220_v26 = vmax.f32 %v215_v23, 0.0 }
  0xf4   :  { %v206_v27 = vsel %vm197_vm7, %v292_v9, %v205_v25  ;;  %v219_v28 = vmin.f32 %v218_v24, 1.0 }
  0xf5   :  { %v216_v29 = vmax.f32 %v206_v27, 0.0  ;;  %v221_v30 = vmin.f32 %v220_v26, 1.0 }
  0xf6   :  { %223 = vst [vmem:[%s340_s2 + $0x4] sm:$0xf] %v219_v28 }
  0xf7   :  { %v217_v31 = vmin.f32 %v216_v29, 1.0  ;;  %224 = vst [vmem:[%s340_s2 + $0x8] sm:$0xf] %v221_v30 }
  0xf9   :  { %222 = vst [vmem:[%s340_s2] sm:$0xf] %v217_v31 }
  0xfa   :  { %229 = vsyncpa [#allocation3], 1 }

</bundles_post_ra>
